<compile_context>
chip_gen: v5e
topology: v5e:2x2
jax: 0.10.0
libtpu: 0.0.40
codegen_flags: <defaults>
</compile_context>

<pallas_src>
import functools

import jax
import jax.numpy as jnp
from jax.experimental import pallas as pl
from jax.experimental.pallas import tpu as pltpu

_LANE = 128


def _maxpool_kernel(x_ref, o_ref, *, kernel_size, stride, H, W, OH, OW):
    # x_ref: (H*W, BNC) block in VMEM  (rows = flattened spatial taps, lanes = N*C)
    # o_ref: (OH*OW, BNC) block in VMEM
    in_dtype = x_ref.dtype
    compute_dtype = jnp.float32 if in_dtype == jnp.bfloat16 else in_dtype

    for oh in range(OH):
        for ow in range(OW):
            acc = None
            for di in range(kernel_size):
                for dj in range(kernel_size):
                    row = (oh * stride + di) * W + (ow * stride + dj)
                    v = x_ref[row, :].astype(compute_dtype)
                    acc = v if acc is None else jnp.maximum(acc, v)
            o_ref[oh * OW + ow, :] = acc.astype(o_ref.dtype)


def my_maxpool(x, kernel_size=3, stride=None):
    """MaxPool2d with ceil_mode=False (floor output size), NCHW layout."""
    if stride is None:
        stride = kernel_size
    N, C, H, W = x.shape
    OH = (H - kernel_size) // stride + 1
    OW = (W - kernel_size) // stride + 1
    if OH <= 0 or OW <= 0:
        raise ValueError(
            f"Input spatial dims ({H},{W}) smaller than kernel_size={kernel_size}"
        )

    NC = N * C
    # Lane-dense re-layout: (N,C,H,W) -> (H,W,N,C) -> (H*W, N*C).
    x2 = jnp.transpose(x, (2, 3, 0, 1)).reshape(H * W, NC)

    # Pad the lane axis up to a multiple of 128 so all vector stores are unmasked.
    NC_pad = pl.cdiv(NC, _LANE) * _LANE
    if NC_pad != NC:
        x2 = jnp.pad(x2, ((0, 0), (0, NC_pad - NC)))

    # Lane-block over the fused N*C axis (multiple of 128, capped for VMEM headroom).
    block_nc = min(NC_pad, 1024)
    while NC_pad % block_nc:
        block_nc -= _LANE
    grid = (NC_pad // block_nc,)

    kernel = functools.partial(
        _maxpool_kernel,
        kernel_size=kernel_size, stride=stride, H=H, W=W, OH=OH, OW=OW)

    out2 = pl.pallas_call(
        kernel,
        out_shape=jax.ShapeDtypeStruct((OH * OW, NC_pad), x.dtype),
        grid=grid,
        in_specs=[pl.BlockSpec((H * W, block_nc), lambda i: (0, i))],
        out_specs=pl.BlockSpec((OH * OW, block_nc), lambda i: (0, i)),
        compiler_params=pltpu.CompilerParams(
            dimension_semantics=("parallel",)),
    )(x2)

    # Drop lane padding and restore the PyTorch NCHW output shape.
    out2 = out2[:, :NC]
    out = out2.reshape(OH, OW, N, C).transpose(2, 3, 0, 1)
    return out


def _reference_maxpool(x, kernel_size=3, stride=None):
    # Pure-JAX reference (same semantics as torch.nn.MaxPool2d, ceil_mode=False).
    if stride is None:
        stride = kernel_size
    return jax.lax.reduce_window(
        x,
        -jnp.inf,
        jax.lax.max,
        window_dimensions=(1, 1, kernel_size, kernel_size),
        window_strides=(1, 1, stride, stride),
        padding="VALID",
    )


if __name__ == "__main__":
    key = jax.random.PRNGKey(0)
    # Mirror `input = torch.reshape(input, (-1, 1, 5, 5))` with batch=2.
    x = jax.random.normal(key, (2 * 1 * 5 * 5,), dtype=jnp.float32)
    x = jnp.reshape(x, (-1, 1, 5, 5))  # (2, 1, 5, 5)

    out = my_maxpool(x)
    out = jax.block_until_ready(out)

    ref = _reference_maxpool(x)
    assert out.shape == (2, 1, 1, 1), out.shape
    assert jnp.allclose(out, ref), (out, ref)

    # Sanity-check a larger, lane-filling case as well (N*C = 512).
    x_big = jax.random.normal(jax.random.PRNGKey(1), (64, 8, 5, 5), jnp.float32)
    out_big = jax.block_until_ready(my_maxpool(x_big))
    assert jnp.allclose(out_big, _reference_maxpool(x_big)), "big case mismatch"

    print("KERNEL_OK")
</pallas_src>

<mosaic_0001>
module attributes {stable_mosaic.version = 11 : i64} {
  func.func @_maxpool_kernel(%arg0: i32, %arg1: memref<25x128xf32, #tpu.memory_space<vmem>>, %arg2: memref<1x128xf32, #tpu.memory_space<vmem>>) attributes {dimension_semantics = [#tpu.dimension_semantics<parallel>], iteration_bounds = array<i64: 1>, scalar_prefetch = 0 : i64, scratch_operands = 0 : i64, tpu.core_type = #tpu.core_type<tc>, window_params = [{transform_indices = @transform_0, window_bounds = array<i64: 25, 128>}, {transform_indices = @transform_1, window_bounds = array<i64: 1, 128>}]} {
    %c0 = arith.constant 0 : index
    %c0_0 = arith.constant 0 : index
    %0 = vector.load %arg1[%c0, %c0_0] : memref<25x128xf32, #tpu.memory_space<vmem>>, vector<1x128xf32>
    %1 = vector.shape_cast %0 : vector<1x128xf32> to vector<128xf32>
    %c1 = arith.constant 1 : index
    %c0_1 = arith.constant 0 : index
    %2 = vector.load %arg1[%c1, %c0_1] : memref<25x128xf32, #tpu.memory_space<vmem>>, vector<1x128xf32>
    %3 = vector.shape_cast %2 : vector<1x128xf32> to vector<128xf32>
    %4 = arith.maximumf %1, %3 : vector<128xf32>
    %c2 = arith.constant 2 : index
    %c0_2 = arith.constant 0 : index
    %5 = vector.load %arg1[%c2, %c0_2] : memref<25x128xf32, #tpu.memory_space<vmem>>, vector<1x128xf32>
    %6 = vector.shape_cast %5 : vector<1x128xf32> to vector<128xf32>
    %7 = arith.maximumf %4, %6 : vector<128xf32>
    %c5 = arith.constant 5 : index
    %c0_3 = arith.constant 0 : index
    %8 = vector.load %arg1[%c5, %c0_3] : memref<25x128xf32, #tpu.memory_space<vmem>>, vector<1x128xf32>
    %9 = vector.shape_cast %8 : vector<1x128xf32> to vector<128xf32>
    %10 = arith.maximumf %7, %9 : vector<128xf32>
    %c6 = arith.constant 6 : index
    %c0_4 = arith.constant 0 : index
    %11 = vector.load %arg1[%c6, %c0_4] : memref<25x128xf32, #tpu.memory_space<vmem>>, vector<1x128xf32>
    %12 = vector.shape_cast %11 : vector<1x128xf32> to vector<128xf32>
    %13 = arith.maximumf %10, %12 : vector<128xf32>
    %c7 = arith.constant 7 : index
    %c0_5 = arith.constant 0 : index
    %14 = vector.load %arg1[%c7, %c0_5] : memref<25x128xf32, #tpu.memory_space<vmem>>, vector<1x128xf32>
    %15 = vector.shape_cast %14 : vector<1x128xf32> to vector<128xf32>
    %16 = arith.maximumf %13, %15 : vector<128xf32>
    %c10 = arith.constant 10 : index
    %c0_6 = arith.constant 0 : index
    %17 = vector.load %arg1[%c10, %c0_6] : memref<25x128xf32, #tpu.memory_space<vmem>>, vector<1x128xf32>
    %18 = vector.shape_cast %17 : vector<1x128xf32> to vector<128xf32>
    %19 = arith.maximumf %16, %18 : vector<128xf32>
    %c11 = arith.constant 11 : index
    %c0_7 = arith.constant 0 : index
    %20 = vector.load %arg1[%c11, %c0_7] : memref<25x128xf32, #tpu.memory_space<vmem>>, vector<1x128xf32>
    %21 = vector.shape_cast %20 : vector<1x128xf32> to vector<128xf32>
    %22 = arith.maximumf %19, %21 : vector<128xf32>
    %c12 = arith.constant 12 : index
    %c0_8 = arith.constant 0 : index
    %23 = vector.load %arg1[%c12, %c0_8] : memref<25x128xf32, #tpu.memory_space<vmem>>, vector<1x128xf32>
    %24 = vector.shape_cast %23 : vector<1x128xf32> to vector<128xf32>
    %25 = arith.maximumf %22, %24 : vector<128xf32>
    %c0_9 = arith.constant 0 : index
    %c0_10 = arith.constant 0 : index
    %26 = vector.load %arg2[%c0_9, %c0_10] : memref<1x128xf32, #tpu.memory_space<vmem>>, vector<1x128xf32>
    %27 = vector.shape_cast %26 : vector<1x128xf32> to vector<128xf32>
    %28 = vector.shape_cast %25 : vector<128xf32> to vector<1x128xf32>
    tpu.vector_store %arg2[%c0_9, %c0_10], %28 {strides = array<i32>} : memref<1x128xf32, #tpu.memory_space<vmem>>, vector<1x128xf32>,
    return
  }
  func.func @transform_0(%arg0: i32) -> (i32, i32) {
    %c0_i32 = arith.constant 0 : i32
    %c0_i32_0 = arith.constant 0 : i32
    return %c0_i32, %arg0 : i32, i32
  }
  func.func @transform_1(%arg0: i32) -> (i32, i32) {
    %c0_i32 = arith.constant 0 : i32
    %c0_i32_0 = arith.constant 0 : i32
    return %c0_i32, %arg0 : i32, i32
  }
}

</mosaic_0001>

<bundles_post_ra>
// kernel: tpu_custom_call.1
= control target key start
LH: loop header
LB: loop body
LE: loop exit
PB: predicated region body
PF: predicated region fallthrough
CT: control target
= control target key end

     0   :  { %6 = vsyncpa [#allocation3], 0  ;;  %s136_s0 = inlined_call_operand.hbm [shape: f32[25,128], index: 0, kind: input, shape index: {}]   ;;  %s137_s1 = inlined_call_operand.hbm [shape: f32[1,128], index: 1, kind: output, shape index: {}]  }
   0x1   :  { %7 = vsyncpa [#allocation4], 0  ;;  %s12_s8 = sshll.u32 %s136_s0, 4  ;;  %s116_s9 = smov [#allocation2]   ;;  %s13_s8 = int_to_ptr.hbm [resolvable:$true] %s12_s8 }
   0x2   :  { %s14_s10 = sshll.u32 %s116_s9, 4  ;;  %s117_s11 = smov 128   ;;  %s15_s10 = int_to_ptr.vmem [resolvable:$true] %s14_s10 }
   0x3   :  { %s118_s12 = smov 8  }
   0x4   :  { %20 = dma.hbm_to_vmem [thread:$0]  %s13_s8, 512, %s15_s10, [#allocation3], %s117_s11, %s117_s11, %s118_s12  }
   0x5   :  { %112 = dma.done.wait [#allocation3], 512  }
   0x6   :  { %113 = vsyncadd [#allocation3], 4294966784  ;;  %v25_v0 = vld [vmem:[#allocation2] sm:$0x1]  ;;  %v26_v1 = vld [vmem:[#allocation2 + $0x1] sm:$0x1] }
   0x7   :  { %v28_v2 = vld [vmem:[#allocation2 + $0x2] sm:$0x1]  ;;  %v27_v3 = vmax.f32 %v25_v0, %v26_v1  ;;  %v30_v4 = vld [vmem:[#allocation2 + $0x5] sm:$0x1]  ;;  %v32_v6 = vld [vmem:[#allocation2 + $0x6] sm:$0x1] }
   0x8   :  { %v34_v8 = vld [vmem:[#allocation2 + $0x7] sm:$0x1]  ;;  %v36_v10 = vld [vmem:[#allocation2 + $0xa] sm:$0x1]  ;;  %v38_v12 = vld [vmem:[#allocation2 + $0xb] sm:$0x1] }
   0x9   :  { %v29_v5 = vmax.f32 %v27_v3, %v28_v2  ;;  %v40_v14 = vld [vmem:[#allocation2 + $0xc] sm:$0x1]  ;;  %s119_s0 = smov [#allocation5]   ;;  %s50_s16 = sshll.u32 %s137_s1, 4  ;;  %s51_s16 = int_to_ptr.hbm [resolvable:$true] %s50_s16 }
   0xa   :  { %s48_s13 = sshll.u32 %s119_s0, 4  ;;  %s49_s13 = int_to_ptr.vmem [resolvable:$true] %s48_s13 }
   0xb   :  { %v31_v7 = vmax.f32 %v29_v5, %v30_v4 }
   0xd   :  { %v33_v9 = vmax.f32 %v31_v7, %v32_v6 }
   0xf   :  { %v35_v11 = vmax.f32 %v33_v9, %v34_v8 }
  0x11   :  { %v37_v13 = vmax.f32 %v35_v11, %v36_v10 }
  0x13   :  { %v39_v15 = vmax.f32 %v37_v13, %v38_v12 }
  0x15   :  { %v41_v16 = vmax.f32 %v39_v15, %v40_v14 }
  0x17   :  { %42 = vst [vmem:[#allocation5] sm:$0x1] %v41_v16 }
  0x18   :  { %53 = dma.vmem_to_hbm [thread:$0]  %s49_s13, 16, %s51_s16, [#allocation4]  }
  0x19   :  { %114 = dma.done.wait [#allocation4], 16  }
  0x1a   :  { %115 = vsyncadd [#allocation4], 4294967280 }
  0x1b   :  { %58 = vsyncpa [#allocation3], 1 }
  0x1c   :  { %59 = vsyncpa [#allocation4], 1 }

</bundles_post_ra>
